<compile_context>
chip_gen: v6e
topology: v6e:2x2x1
jax: 0.10.0
libtpu: 0.0.40
codegen_flags: <defaults>
</compile_context>

<pallas_src>
import functools

import jax
import jax.numpy as jnp
from jax.experimental import pallas as pl
from jax.experimental.pallas import tpu as pltpu


def _cma_kernel(x_ref, wqkv_ref, bqkv_ref, wo_ref, vec_ref, o_ref, *, d_real, num_heads):
    B, S, Dp = x_ref.shape
    H = num_heads
    dh = d_real // H
    R = B * S                                                   # batch folded into sublanes

    x = x_ref[...].astype(jnp.float32).reshape(R, Dp)           # (R, Dp) f32, pads are zero

    # ---- Fused QKV projection: ONE wide bf16 MXU matmul (R, Dp) @ (Dp, 3D). ----
    qkv = jnp.dot(x.astype(jnp.bfloat16), wqkv_ref[...],
                  preferred_element_type=jnp.float32)           # (R, 3D) f32
    qkv = qkv + bqkv_ref[...]                                   # single lane-dense bias row
    qkv = qkv.reshape(B, S, 3 * d_real)                         # leading-dim split (free)

    # ---- Attention: per-head S x S work, batched over B per head (flash-style einsums).
    # 1/sqrt(dh) is already folded into Wq / bq in the wrapper.
    ctx_heads = []
    for h in range(H):
        qh = qkv[:, :, h * dh:(h + 1) * dh].astype(jnp.bfloat16)                       # (B,S,dh)
        kh = qkv[:, :, d_real + h * dh:d_real + (h + 1) * dh].astype(jnp.bfloat16)
        vh = qkv[:, :, 2 * d_real + h * dh:2 * d_real + (h + 1) * dh].astype(jnp.bfloat16)

        s = jnp.einsum("bqe,bke->bqk", qh, kh,
                       preferred_element_type=jnp.float32)      # (B,S,S) f32
        s = s - jnp.max(s, axis=-1, keepdims=True)
        p = jnp.exp(s)
        l = jnp.sum(p, axis=-1, keepdims=True)
        p = p * pl.reciprocal(l, approx=True)                   # EUP reciprocal, no divide

        ctx_heads.append(jnp.einsum("bqk,bke->bqe", p.astype(jnp.bfloat16), vh,
                                    preferred_element_type=jnp.float32))               # (B,S,dh)

    # ---- Head merge fused into the output projection: one lane concat + one matmul. ----
    ctx = jnp.concatenate(ctx_heads, axis=-1).reshape(R, d_real)                        # (R, D)
    vec = vec_ref[...].astype(jnp.float32)                      # (3, Dp): [bo; gamma; beta]
    attn = jnp.dot(ctx.astype(jnp.bfloat16), wo_ref[...],
                   preferred_element_type=jnp.float32) + vec[0:1, :]                    # (R, Dp)
    # Padded Wo columns / bo lanes are zero, so attn's pad lanes stay exactly zero.

    # ---- Residual (dropout == identity in eval) + LayerNorm over the D real lanes. ----
    res = x + attn                                              # pad lanes remain zero
    inv_d = 1.0 / d_real
    mean = jnp.sum(res, axis=-1, keepdims=True) * inv_d         # zero pads -> correct sums
    msq = jnp.sum(res * res, axis=-1, keepdims=True) * inv_d
    var = jnp.maximum(msq - mean * mean, 0.0)
    inv = jax.lax.rsqrt(var + 1e-5)
    out = (res - mean) * inv * vec[1:2, :] + vec[2:3, :]        # gamma/beta pads zero -> out pads zero

    o_ref[...] = out.reshape(B, S, Dp).astype(o_ref.dtype)


def cross_modal_attention(x_sbd, params, num_heads=4):
    """x_sbd: (S, B, D), PyTorch seq-first MultiheadAttention layout."""
    S, B, D = x_sbd.shape
    # Degenerate-input branch: mirrors the PyTorch module exactly
    # (returns zeros of shape (0, batch_size, 0) whenever S == 0 or D == 0).
    if S == 0 or D == 0:
        bs = B if B > 0 else 1
        return jnp.zeros((0, bs, 0), dtype=x_sbd.dtype)

    H = num_heads
    assert D % H == 0, "embed dim must be divisible by num_heads"
    dh = D // H
    scale = 1.0 / (dh ** 0.5)

    LANE = 128
    Dp = ((D + LANE - 1) // LANE) * LANE                        # lane-dense padded model dim
    pad = Dp - D

    # Fused (Dp, 3D) QKV weight in PyTorch column layout [Q | K | V]; scale folded into Q.
    wqkv = jnp.concatenate([(params["wq"] * scale).T, params["wk"].T, params["wv"].T],
                           axis=1)                                                    # (D, 3D)
    wqkv = jnp.pad(wqkv, ((0, pad), (0, 0))).astype(jnp.bfloat16)                     # (Dp, 3D)
    bqkv = jnp.concatenate([params["bq"] * scale, params["bk"], params["bv"]],
                           axis=1).astype(jnp.float32)                                # (1, 3D)
    # Output projection kept as (D, Dp): ctx(R,D) @ Wo^T, output columns lane-padded.
    wo_t = jnp.pad(params["wo"].T, ((0, 0), (0, pad))).astype(jnp.bfloat16)           # (D, Dp)
    # Packed vector slab (rows: bo, gamma, beta), zero-padded so output pads stay zero.
    vecs = jnp.pad(jnp.concatenate([params["bo"], params["gamma"], params["beta"]], axis=0),
                   ((0, 0), (0, pad))).astype(jnp.float32)                            # (3, Dp)

    x_bsd = jnp.pad(jnp.transpose(x_sbd, (1, 0, 2)),
                    ((0, 0), (0, 0), (0, pad)))                                       # (B, S, Dp)

    kernel = functools.partial(_cma_kernel, d_real=D, num_heads=H)
    out = pl.pallas_call(
        kernel,
        out_shape=jax.ShapeDtypeStruct((B, S, Dp), x_sbd.dtype),
        grid=(1,),                                              # whole (tiny) batch per step
        in_specs=[
            pl.BlockSpec((B, S, Dp), lambda i: (0, 0, 0)),      # x, lane-padded
            pl.BlockSpec((Dp, 3 * D), lambda i: (0, 0)),        # fused QKV weight (bf16)
            pl.BlockSpec((1, 3 * D), lambda i: (0, 0)),         # fused QKV bias row (f32)
            pl.BlockSpec((D, Dp), lambda i: (0, 0)),            # Wo^T, output cols padded (bf16)
            pl.BlockSpec((3, Dp), lambda i: (0, 0)),            # [bo; gamma; beta] (f32)
        ],
        out_specs=pl.BlockSpec((B, S, Dp), lambda i: (0, 0, 0)),
        compiler_params=pltpu.CompilerParams(dimension_semantics=("parallel",)),
    )(x_bsd, wqkv, bqkv, wo_t, vecs)

    return jnp.transpose(out[:, :, :D], (1, 0, 2))              # drop pad, back to (S, B, D)


def _reference(x_sbd, params, num_heads=4):
    """Pure-JAX f32 reference of the same forward pass (for validation)."""
    S, B, D = x_sbd.shape
    dh = D // num_heads
    x = jnp.transpose(x_sbd, (1, 0, 2)).astype(jnp.float32)     # (B, S, D)
    q = x @ params["wq"].T + params["bq"][0]
    k = x @ params["wk"].T + params["bk"][0]
    v = x @ params["wv"].T + params["bv"][0]

    def split(t):  # (B, S, D) -> (B, H, S, dh)
        return jnp.transpose(t.reshape(B, S, num_heads, dh), (0, 2, 1, 3))

    qh, kh, vh = split(q), split(k), split(v)
    s = jnp.einsum("bhqd,bhkd->bhqk", qh, kh) / (dh ** 0.5)
    p = jax.nn.softmax(s, axis=-1)
    o = jnp.einsum("bhqk,bhkd->bhqd", p, vh)
    o = jnp.transpose(o, (0, 2, 1, 3)).reshape(B, S, D)
    o = o @ params["wo"].T + params["bo"][0]
    res = x + o
    mean = jnp.mean(res, axis=-1, keepdims=True)
    var = jnp.mean((res - mean) ** 2, axis=-1, keepdims=True)
    out = (res - mean) * jax.lax.rsqrt(var + 1e-5) * params["gamma"][0] + params["beta"][0]
    return jnp.transpose(out, (1, 0, 2))


def _init_params(key, dim):
    keys = jax.random.split(key, 8)
    scl = 0.05
    return {
        "wq": scl * jax.random.normal(keys[0], (dim, dim), jnp.float32),
        "wk": scl * jax.random.normal(keys[1], (dim, dim), jnp.float32),
        "wv": scl * jax.random.normal(keys[2], (dim, dim), jnp.float32),
        "bq": scl * jax.random.normal(keys[3], (1, dim), jnp.float32),
        "bk": scl * jax.random.normal(keys[4], (1, dim), jnp.float32),
        "bv": scl * jax.random.normal(keys[5], (1, dim), jnp.float32),
        "wo": scl * jax.random.normal(keys[6], (dim, dim), jnp.float32),
        "bo": scl * jax.random.normal(keys[7], (1, dim), jnp.float32),
        "gamma": jnp.ones((1, dim), jnp.float32),
        "beta": jnp.zeros((1, dim), jnp.float32),
    }


if __name__ == "__main__":
    SEQ, BATCH, DIM, HEADS = 8, 2, 32, 4
    key = jax.random.PRNGKey(0)
    kx, kp = jax.random.split(key)
    x = jax.random.normal(kx, (SEQ, BATCH, DIM), jnp.float32)   # (S, B, D)
    params = _init_params(kp, DIM)

    out = cross_modal_attention(x, params, num_heads=HEADS)
    out = jax.block_until_ready(out)

    ref = _reference(x, params, num_heads=HEADS)
    assert out.shape == (SEQ, BATCH, DIM)
    # Tolerance relaxed for bf16 MXU operands + approx reciprocal (f32 accumulation).
    assert jnp.allclose(out, ref, rtol=2e-2, atol=2e-2), "mismatch vs pure-JAX reference"

    print("KERNEL_OK")
</pallas_src>

<mosaic_0001>
module attributes {stable_mosaic.version = 11 : i64} {
  func.func @_cma_kernel(%arg0: i32, %arg1: memref<2x8x128xf32, #tpu.memory_space<vmem>>, %arg2: memref<128x96xbf16, #tpu.memory_space<vmem>>, %arg3: memref<1x96xf32, #tpu.memory_space<vmem>>, %arg4: memref<32x128xbf16, #tpu.memory_space<vmem>>, %arg5: memref<3x128xf32, #tpu.memory_space<vmem>>, %arg6: memref<2x8x128xf32, #tpu.memory_space<vmem>>) attributes {dimension_semantics = [#tpu.dimension_semantics<parallel>], iteration_bounds = array<i64: 1>, scalar_prefetch = 0 : i64, scratch_operands = 0 : i64, tpu.core_type = #tpu.core_type<tc>, window_params = [{pipeline_mode = #tpu.pipeline_mode<synchronous>, transform_indices = @transform_0, window_bounds = array<i64: 2, 8, 128>}, {pipeline_mode = #tpu.pipeline_mode<synchronous>, transform_indices = @transform_1, window_bounds = array<i64: 128, 96>}, {pipeline_mode = #tpu.pipeline_mode<synchronous>, transform_indices = @transform_2, window_bounds = array<i64: 1, 96>}, {pipeline_mode = #tpu.pipeline_mode<synchronous>, transform_indices = @transform_3, window_bounds = array<i64: 32, 128>}, {pipeline_mode = #tpu.pipeline_mode<synchronous>, transform_indices = @transform_4, window_bounds = array<i64: 3, 128>}, {pipeline_mode = #tpu.pipeline_mode<synchronous>, transform_indices = @transform_5, window_bounds = array<i64: 2, 8, 128>}]} {
    %c0 = arith.constant 0 : index
    %c0_0 = arith.constant 0 : index
    %c0_1 = arith.constant 0 : index
    %0 = vector.load %arg1[%c0, %c0_0, %c0_1] : memref<2x8x128xf32, #tpu.memory_space<vmem>>, vector<2x8x128xf32>
    %1 = vector.shape_cast %0 : vector<2x8x128xf32> to vector<16x128xf32>
    %2 = arith.truncf %1 : vector<16x128xf32> to vector<16x128xbf16>
    %c0_2 = arith.constant 0 : index
    %c0_3 = arith.constant 0 : index
    %3 = vector.load %arg2[%c0_2, %c0_3] : memref<128x96xbf16, #tpu.memory_space<vmem>>, vector<128x96xbf16>
    %cst = arith.constant dense<0.000000e+00> : vector<16x96xf32>
    %4 = tpu.matmul %2, %3, %cst {dimension_numbers = #tpu.dot_dimension_numbers<[1], [0], [0], [1], [0, 0, 1, 1], [], []>} : vector<16x128xbf16>, vector<128x96xbf16>, vector<16x96xf32> -> vector<16x96xf32>
    %c0_4 = arith.constant 0 : index
    %c0_5 = arith.constant 0 : index
    %5 = vector.load %arg3[%c0_4, %c0_5] : memref<1x96xf32, #tpu.memory_space<vmem>>, vector<1x96xf32>
    %6 = vector.broadcast %5 : vector<1x96xf32> to vector<16x96xf32>
    %7 = arith.addf %4, %6 : vector<16x96xf32>
    %8 = vector.shape_cast %7 : vector<16x96xf32> to vector<2x8x96xf32>
    %9 = vector.extract_strided_slice %8 {offsets = [0, 0, 0], sizes = [2, 8, 8], strides = [1, 1, 1]} : vector<2x8x96xf32> to vector<2x8x8xf32>
    %10 = arith.truncf %9 : vector<2x8x8xf32> to vector<2x8x8xbf16>
    %11 = vector.extract_strided_slice %8 {offsets = [0, 0, 32], sizes = [2, 8, 8], strides = [1, 1, 1]} : vector<2x8x96xf32> to vector<2x8x8xf32>
    %12 = arith.truncf %11 : vector<2x8x8xf32> to vector<2x8x8xbf16>
    %13 = vector.extract_strided_slice %8 {offsets = [0, 0, 64], sizes = [2, 8, 8], strides = [1, 1, 1]} : vector<2x8x96xf32> to vector<2x8x8xf32>
    %14 = arith.truncf %13 : vector<2x8x8xf32> to vector<2x8x8xbf16>
    "tpu.trace_start"() <{level = 10 : i32, message = "bqe,bke->bqk"}> : () -> ()
    %cst_6 = arith.constant dense<0.000000e+00> : vector<2x8x8xf32>
    %15 = tpu.matmul %10, %12, %cst_6 {dimension_numbers = #tpu.dot_dimension_numbers<[2], [2], [1], [1], [0, 0, 0, 1, 1, 1], [0], [0]>} : vector<2x8x8xbf16>, vector<2x8x8xbf16>, vector<2x8x8xf32> -> vector<2x8x8xf32>
    "tpu.trace_stop"() : () -> ()
    %cst_7 = arith.constant dense<0xFF800000> : vector<2x8xf32>
    %16 = vector.multi_reduction <maximumf>, %15, %cst_7 [2] : vector<2x8x8xf32> to vector<2x8xf32>
    %17 = vector.shape_cast %16 : vector<2x8xf32> to vector<2x8x1xf32>
    %18 = vector.broadcast %17 : vector<2x8x1xf32> to vector<2x8x8xf32>
    %19 = arith.subf %15, %18 : vector<2x8x8xf32>
    %20 = math.exp %19 : vector<2x8x8xf32>
    %cst_8 = arith.constant dense<0.000000e+00> : vector<2x8xf32>
    %21 = vector.multi_reduction <add>, %20, %cst_8 [2] : vector<2x8x8xf32> to vector<2x8xf32>
    %22 = vector.shape_cast %21 : vector<2x8xf32> to vector<2x8x1xf32>
    %23 = tpu.reciprocal %22 {approx = true} : vector<2x8x1xf32> -> vector<2x8x1xf32>
    %24 = vector.broadcast %23 : vector<2x8x1xf32> to vector<2x8x8xf32>
    %25 = arith.mulf %20, %24 : vector<2x8x8xf32>
    %26 = arith.truncf %25 : vector<2x8x8xf32> to vector<2x8x8xbf16>
    "tpu.trace_start"() <{level = 10 : i32, message = "bqk,bke->bqe"}> : () -> ()
    %cst_9 = arith.constant dense<0.000000e+00> : vector<2x8x8xf32>
    %27 = tpu.matmul %26, %14, %cst_9 {dimension_numbers = #tpu.dot_dimension_numbers<[2], [1], [1], [2], [0, 0, 0, 1, 1, 2], [0], [0]>} : vector<2x8x8xbf16>, vector<2x8x8xbf16>, vector<2x8x8xf32> -> vector<2x8x8xf32>
    "tpu.trace_stop"() : () -> ()
    %28 = vector.extract_strided_slice %8 {offsets = [0, 0, 8], sizes = [2, 8, 8], strides = [1, 1, 1]} : vector<2x8x96xf32> to vector<2x8x8xf32>
    %29 = arith.truncf %28 : vector<2x8x8xf32> to vector<2x8x8xbf16>
    %30 = vector.extract_strided_slice %8 {offsets = [0, 0, 40], sizes = [2, 8, 8], strides = [1, 1, 1]} : vector<2x8x96xf32> to vector<2x8x8xf32>
    %31 = arith.truncf %30 : vector<2x8x8xf32> to vector<2x8x8xbf16>
    %32 = vector.extract_strided_slice %8 {offsets = [0, 0, 72], sizes = [2, 8, 8], strides = [1, 1, 1]} : vector<2x8x96xf32> to vector<2x8x8xf32>
    %33 = arith.truncf %32 : vector<2x8x8xf32> to vector<2x8x8xbf16>
    "tpu.trace_start"() <{level = 10 : i32, message = "bqe,bke->bqk"}> : () -> ()
    %cst_10 = arith.constant dense<0.000000e+00> : vector<2x8x8xf32>
    %34 = tpu.matmul %29, %31, %cst_10 {dimension_numbers = #tpu.dot_dimension_numbers<[2], [2], [1], [1], [0, 0, 0, 1, 1, 1], [0], [0]>} : vector<2x8x8xbf16>, vector<2x8x8xbf16>, vector<2x8x8xf32> -> vector<2x8x8xf32>
    "tpu.trace_stop"() : () -> ()
    %cst_11 = arith.constant dense<0xFF800000> : vector<2x8xf32>
    %35 = vector.multi_reduction <maximumf>, %34, %cst_11 [2] : vector<2x8x8xf32> to vector<2x8xf32>
    %36 = vector.shape_cast %35 : vector<2x8xf32> to vector<2x8x1xf32>
    %37 = vector.broadcast %36 : vector<2x8x1xf32> to vector<2x8x8xf32>
    %38 = arith.subf %34, %37 : vector<2x8x8xf32>
    %39 = math.exp %38 : vector<2x8x8xf32>
    %cst_12 = arith.constant dense<0.000000e+00> : vector<2x8xf32>
    %40 = vector.multi_reduction <add>, %39, %cst_12 [2] : vector<2x8x8xf32> to vector<2x8xf32>
    %41 = vector.shape_cast %40 : vector<2x8xf32> to vector<2x8x1xf32>
    %42 = tpu.reciprocal %41 {approx = true} : vector<2x8x1xf32> -> vector<2x8x1xf32>
    %43 = vector.broadcast %42 : vector<2x8x1xf32> to vector<2x8x8xf32>
    %44 = arith.mulf %39, %43 : vector<2x8x8xf32>
    %45 = arith.truncf %44 : vector<2x8x8xf32> to vector<2x8x8xbf16>
    "tpu.trace_start"() <{level = 10 : i32, message = "bqk,bke->bqe"}> : () -> ()
    %cst_13 = arith.constant dense<0.000000e+00> : vector<2x8x8xf32>
    %46 = tpu.matmul %45, %33, %cst_13 {dimension_numbers = #tpu.dot_dimension_numbers<[2], [1], [1], [2], [0, 0, 0, 1, 1, 2], [0], [0]>} : vector<2x8x8xbf16>, vector<2x8x8xbf16>, vector<2x8x8xf32> -> vector<2x8x8xf32>
    "tpu.trace_stop"() : () -> ()
    %47 = vector.extract_strided_slice %8 {offsets = [0, 0, 16], sizes = [2, 8, 8], strides = [1, 1, 1]} : vector<2x8x96xf32> to vector<2x8x8xf32>
    %48 = arith.truncf %47 : vector<2x8x8xf32> to vector<2x8x8xbf16>
    %49 = vector.extract_strided_slice %8 {offsets = [0, 0, 48], sizes = [2, 8, 8], strides = [1, 1, 1]} : vector<2x8x96xf32> to vector<2x8x8xf32>
    %50 = arith.truncf %49 : vector<2x8x8xf32> to vector<2x8x8xbf16>
    %51 = vector.extract_strided_slice %8 {offsets = [0, 0, 80], sizes = [2, 8, 8], strides = [1, 1, 1]} : vector<2x8x96xf32> to vector<2x8x8xf32>
    %52 = arith.truncf %51 : vector<2x8x8xf32> to vector<2x8x8xbf16>
    "tpu.trace_start"() <{level = 10 : i32, message = "bqe,bke->bqk"}> : () -> ()
    %cst_14 = arith.constant dense<0.000000e+00> : vector<2x8x8xf32>
    %53 = tpu.matmul %48, %50, %cst_14 {dimension_numbers = #tpu.dot_dimension_numbers<[2], [2], [1], [1], [0, 0, 0, 1, 1, 1], [0], [0]>} : vector<2x8x8xbf16>, vector<2x8x8xbf16>, vector<2x8x8xf32> -> vector<2x8x8xf32>
    "tpu.trace_stop"() : () -> ()
    %cst_15 = arith.constant dense<0xFF800000> : vector<2x8xf32>
    %54 = vector.multi_reduction <maximumf>, %53, %cst_15 [2] : vector<2x8x8xf32> to vector<2x8xf32>
    %55 = vector.shape_cast %54 : vector<2x8xf32> to vector<2x8x1xf32>
    %56 = vector.broadcast %55 : vector<2x8x1xf32> to vector<2x8x8xf32>
    %57 = arith.subf %53, %56 : vector<2x8x8xf32>
    %58 = math.exp %57 : vector<2x8x8xf32>
    %cst_16 = arith.constant dense<0.000000e+00> : vector<2x8xf32>
    %59 = vector.multi_reduction <add>, %58, %cst_16 [2] : vector<2x8x8xf32> to vector<2x8xf32>
    %60 = vector.shape_cast %59 : vector<2x8xf32> to vector<2x8x1xf32>
    %61 = tpu.reciprocal %60 {approx = true} : vector<2x8x1xf32> -> vector<2x8x1xf32>
    %62 = vector.broadcast %61 : vector<2x8x1xf32> to vector<2x8x8xf32>
    %63 = arith.mulf %58, %62 : vector<2x8x8xf32>
    %64 = arith.truncf %63 : vector<2x8x8xf32> to vector<2x8x8xbf16>
    "tpu.trace_start"() <{level = 10 : i32, message = "bqk,bke->bqe"}> : () -> ()
    %cst_17 = arith.constant dense<0.000000e+00> : vector<2x8x8xf32>
    %65 = tpu.matmul %64, %52, %cst_17 {dimension_numbers = #tpu.dot_dimension_numbers<[2], [1], [1], [2], [0, 0, 0, 1, 1, 2], [0], [0]>} : vector<2x8x8xbf16>, vector<2x8x8xbf16>, vector<2x8x8xf32> -> vector<2x8x8xf32>
    "tpu.trace_stop"() : () -> ()
    %66 = vector.extract_strided_slice %8 {offsets = [0, 0, 24], sizes = [2, 8, 8], strides = [1, 1, 1]} : vector<2x8x96xf32> to vector<2x8x8xf32>
    %67 = arith.truncf %66 : vector<2x8x8xf32> to vector<2x8x8xbf16>
    %68 = vector.extract_strided_slice %8 {offsets = [0, 0, 56], sizes = [2, 8, 8], strides = [1, 1, 1]} : vector<2x8x96xf32> to vector<2x8x8xf32>
    %69 = arith.truncf %68 : vector<2x8x8xf32> to vector<2x8x8xbf16>
    %70 = vector.extract_strided_slice %8 {offsets = [0, 0, 88], sizes = [2, 8, 8], strides = [1, 1, 1]} : vector<2x8x96xf32> to vector<2x8x8xf32>
    %71 = arith.truncf %70 : vector<2x8x8xf32> to vector<2x8x8xbf16>
    "tpu.trace_start"() <{level = 10 : i32, message = "bqe,bke->bqk"}> : () -> ()
    %cst_18 = arith.constant dense<0.000000e+00> : vector<2x8x8xf32>
    %72 = tpu.matmul %67, %69, %cst_18 {dimension_numbers = #tpu.dot_dimension_numbers<[2], [2], [1], [1], [0, 0, 0, 1, 1, 1], [0], [0]>} : vector<2x8x8xbf16>, vector<2x8x8xbf16>, vector<2x8x8xf32> -> vector<2x8x8xf32>
    "tpu.trace_stop"() : () -> ()
    %cst_19 = arith.constant dense<0xFF800000> : vector<2x8xf32>
    %73 = vector.multi_reduction <maximumf>, %72, %cst_19 [2] : vector<2x8x8xf32> to vector<2x8xf32>
    %74 = vector.shape_cast %73 : vector<2x8xf32> to vector<2x8x1xf32>
    %75 = vector.broadcast %74 : vector<2x8x1xf32> to vector<2x8x8xf32>
    %76 = arith.subf %72, %75 : vector<2x8x8xf32>
    %77 = math.exp %76 : vector<2x8x8xf32>
    %cst_20 = arith.constant dense<0.000000e+00> : vector<2x8xf32>
    %78 = vector.multi_reduction <add>, %77, %cst_20 [2] : vector<2x8x8xf32> to vector<2x8xf32>
    %79 = vector.shape_cast %78 : vector<2x8xf32> to vector<2x8x1xf32>
    %80 = tpu.reciprocal %79 {approx = true} : vector<2x8x1xf32> -> vector<2x8x1xf32>
    %81 = vector.broadcast %80 : vector<2x8x1xf32> to vector<2x8x8xf32>
    %82 = arith.mulf %77, %81 : vector<2x8x8xf32>
    %83 = arith.truncf %82 : vector<2x8x8xf32> to vector<2x8x8xbf16>
    "tpu.trace_start"() <{level = 10 : i32, message = "bqk,bke->bqe"}> : () -> ()
    %cst_21 = arith.constant dense<0.000000e+00> : vector<2x8x8xf32>
    %84 = tpu.matmul %83, %71, %cst_21 {dimension_numbers = #tpu.dot_dimension_numbers<[2], [1], [1], [2], [0, 0, 0, 1, 1, 2], [0], [0]>} : vector<2x8x8xbf16>, vector<2x8x8xbf16>, vector<2x8x8xf32> -> vector<2x8x8xf32>
    "tpu.trace_stop"() : () -> ()
    %85 = tpu.concatenate %27, %46, %65, %84 in 2 : vector<2x8x8xf32>, vector<2x8x8xf32>, vector<2x8x8xf32>, vector<2x8x8xf32> -> vector<2x8x32xf32>
    %86 = vector.shape_cast %85 : vector<2x8x32xf32> to vector<16x32xf32>
    %c0_22 = arith.constant 0 : index
    %c0_23 = arith.constant 0 : index
    %87 = vector.load %arg5[%c0_22, %c0_23] : memref<3x128xf32, #tpu.memory_space<vmem>>, vector<3x128xf32>
    %88 = arith.truncf %86 : vector<16x32xf32> to vector<16x32xbf16>
    %c0_24 = arith.constant 0 : index
    %c0_25 = arith.constant 0 : index
    %89 = vector.load %arg4[%c0_24, %c0_25] : memref<32x128xbf16, #tpu.memory_space<vmem>>, vector<32x128xbf16>
    %cst_26 = arith.constant dense<0.000000e+00> : vector<16x128xf32>
    %90 = tpu.matmul %88, %89, %cst_26 {dimension_numbers = #tpu.dot_dimension_numbers<[1], [0], [0], [1], [0, 0, 1, 1], [], []>} : vector<16x32xbf16>, vector<32x128xbf16>, vector<16x128xf32> -> vector<16x128xf32>
    %91 = vector.extract_strided_slice %87 {offsets = [0, 0], sizes = [1, 128], strides = [1, 1]} : vector<3x128xf32> to vector<1x128xf32>
    %92 = vector.broadcast %91 : vector<1x128xf32> to vector<16x128xf32>
    %93 = arith.addf %90, %92 : vector<16x128xf32>
    %94 = arith.addf %1, %93 : vector<16x128xf32>
    %cst_27 = arith.constant dense<0.000000e+00> : vector<16xf32>
    %95 = vector.multi_reduction <add>, %94, %cst_27 [1] : vector<16x128xf32> to vector<16xf32>
    %96 = vector.shape_cast %95 : vector<16xf32> to vector<16x1xf32>
    %cst_28 = arith.constant 3.125000e-02 : f32
    %97 = vector.broadcast %cst_28 : f32 to vector<16x1xf32>
    %98 = arith.mulf %96, %97 : vector<16x1xf32>
    %99 = arith.mulf %94, %94 : vector<16x128xf32>
    %cst_29 = arith.constant dense<0.000000e+00> : vector<16xf32>
    %100 = vector.multi_reduction <add>, %99, %cst_29 [1] : vector<16x128xf32> to vector<16xf32>
    %101 = vector.shape_cast %100 : vector<16xf32> to vector<16x1xf32>
    %cst_30 = arith.constant 3.125000e-02 : f32
    %102 = vector.broadcast %cst_30 : f32 to vector<16x1xf32>
    %103 = arith.mulf %101, %102 : vector<16x1xf32>
    %104 = arith.mulf %98, %98 : vector<16x1xf32>
    %105 = arith.subf %103, %104 : vector<16x1xf32>
    %cst_31 = arith.constant 0.000000e+00 : f32
    %106 = vector.broadcast %cst_31 : f32 to vector<16x1xf32>
    %107 = arith.maximumf %105, %106 : vector<16x1xf32>
    %cst_32 = arith.constant 9.99999974E-6 : f32
    %108 = vector.broadcast %cst_32 : f32 to vector<16x1xf32>
    %109 = arith.addf %107, %108 : vector<16x1xf32>
    %110 = math.rsqrt %109 : vector<16x1xf32>
    %111 = vector.broadcast %98 : vector<16x1xf32> to vector<16x128xf32>
    %112 = arith.subf %94, %111 : vector<16x128xf32>
    %113 = vector.broadcast %110 : vector<16x1xf32> to vector<16x128xf32>
    %114 = arith.mulf %112, %113 : vector<16x128xf32>
    %115 = vector.extract_strided_slice %87 {offsets = [1, 0], sizes = [1, 128], strides = [1, 1]} : vector<3x128xf32> to vector<1x128xf32>
    %116 = vector.broadcast %115 : vector<1x128xf32> to vector<16x128xf32>
    %117 = arith.mulf %114, %116 : vector<16x128xf32>
    %118 = vector.extract_strided_slice %87 {offsets = [2, 0], sizes = [1, 128], strides = [1, 1]} : vector<3x128xf32> to vector<1x128xf32>
    %119 = vector.broadcast %118 : vector<1x128xf32> to vector<16x128xf32>
    %120 = arith.addf %117, %119 : vector<16x128xf32>
    %121 = vector.shape_cast %120 : vector<16x128xf32> to vector<2x8x128xf32>
    %c0_33 = arith.constant 0 : index
    %c0_34 = arith.constant 0 : index
    %c0_35 = arith.constant 0 : index
    %122 = vector.load %arg6[%c0_33, %c0_34, %c0_35] : memref<2x8x128xf32, #tpu.memory_space<vmem>>, vector<2x8x128xf32>
    tpu.vector_store %arg6[%c0_33, %c0_34, %c0_35], %121 {strides = array<i32>} : memref<2x8x128xf32, #tpu.memory_space<vmem>>, vector<2x8x128xf32>,
    return
  }
  func.func @transform_0(%arg0: i32) -> (i32, i32, i32) {
    %c0_i32 = arith.constant 0 : i32
    %c0_i32_0 = arith.constant 0 : i32
    %c0_i32_1 = arith.constant 0 : i32
    %c0_i32_2 = arith.constant 0 : i32
    return %c0_i32, %c0_i32_0, %c0_i32_1 : i32, i32, i32
  }
  func.func @transform_1(%arg0: i32) -> (i32, i32) {
    %c0_i32 = arith.constant 0 : i32
    %c0_i32_0 = arith.constant 0 : i32
    %c0_i32_1 = arith.constant 0 : i32
    return %c0_i32, %c0_i32_0 : i32, i32
  }
  func.func @transform_2(%arg0: i32) -> (i32, i32) {
    %c0_i32 = arith.constant 0 : i32
    %c0_i32_0 = arith.constant 0 : i32
    %c0_i32_1 = arith.constant 0 : i32
    return %c0_i32, %c0_i32_0 : i32, i32
  }
  func.func @transform_3(%arg0: i32) -> (i32, i32) {
    %c0_i32 = arith.constant 0 : i32
    %c0_i32_0 = arith.constant 0 : i32
    %c0_i32_1 = arith.constant 0 : i32
    return %c0_i32, %c0_i32_0 : i32, i32
  }
  func.func @transform_4(%arg0: i32) -> (i32, i32) {
    %c0_i32 = arith.constant 0 : i32
    %c0_i32_0 = arith.constant 0 : i32
    %c0_i32_1 = arith.constant 0 : i32
    return %c0_i32, %c0_i32_0 : i32, i32
  }
  func.func @transform_5(%arg0: i32) -> (i32, i32, i32) {
    %c0_i32 = arith.constant 0 : i32
    %c0_i32_0 = arith.constant 0 : i32
    %c0_i32_1 = arith.constant 0 : i32
    %c0_i32_2 = arith.constant 0 : i32
    return %c0_i32, %c0_i32_0, %c0_i32_1 : i32, i32, i32
  }
}

</mosaic_0001>

<bundles_post_ra>
// kernel: tpu_custom_call.1
= control target key start
LH: loop header
LB: loop body
LE: loop exit
PB: predicated region body
PF: predicated region fallthrough
CT: control target
= control target key end

     0   :  { %v1475_v1 = vmov 0.0   ;;  %vm1476_vm0 = vmmov 0   ;;  %s1733_s0 = inlined_call_operand.vmem [shape: f32[2,8,128], index: 0, kind: input, shape index: {}]   ;;  %s1734_s1 = inlined_call_operand.vmem [shape: bf16[128,96], index: 1, kind: input, shape index: {}]   ;;  %s1735_s2 = inlined_call_operand.vmem [shape: f32[1,96], index: 2, kind: input, shape index: {}]   ;;  %s1736_s3 = inlined_call_operand.vmem [shape: bf16[32,128], index: 3, kind: input, shape index: {}]   ;;  %s1737_s4 = inlined_call_operand.vmem [shape: f32[3,128], index: 4, kind: input, shape index: {}]   ;;  %s1738_s5 = inlined_call_operand.hbm [shape: f32[2,8,128], index: 5, kind: output, shape index: {}]  }
   0x1   :  { %v1407_v0 = vld [vmem:[%s1734_s1 + $0x38] sm:$0xff]   ;;  %1250 = vmatprep.subr.bf16.mxu0 %v1475_v1  ;;  %1270 = vmatprep.subr.bf16.mxu1 %v1475_v1  ;;  %v1408_v2 = vld [vmem:[%s1734_s1 + $0x30] sm:$0xff]   ;;  %v1409_v3 = vld [vmem:[%s1734_s1 + $0x28] sm:$0xff]  }
   0x2   :  { %1251 = vmatpush3.bf16.msra.mxu0 %v1407_v0  ;;  %1266 = vmatprep.mubr.msk.bf16.mxu0 %vm1476_vm0, %v1475_v1  ;;  %v1410_v4 = vld [vmem:[%s1734_s1 + $0x20] sm:$0xff]  }
   0x3   :  { %1252 = vmatprep.subr.bf16.mxu0 %v1475_v1  ;;  %1272 = vmatprep.mubr.msk.bf16.mxu1 %vm1476_vm0, %v1475_v1 }
   0x6   :  { %1253 = vmatpush3.bf16.msra.mxu0 %v1408_v2 }
   0x7   :  { %1254 = vmatprep.subr.bf16.mxu0 %v1475_v1 }
   0xa   :  { %1255 = vmatpush3.bf16.msra.mxu0 %v1409_v3 }
   0xb   :  { %10 = vsyncpa [#allocation3], 0  ;;  %1256 = vmatprep.subr.bf16.mxu0 %v1475_v1  ;;  %v1411_v5 = vld [vmem:[%s1734_s1 + $0x18] sm:$0xff]   ;;  %v1412_v6 = vld [vmem:[%s1734_s1 + $0x10] sm:$0xff]   ;;  %vm142_vm1 = vcmask 64512   ;;  %s1479_s14 = smov 88  }
   0xc   :  { %v1413_v7 = vld [vmem:[%s1734_s1 + $0x8] sm:$0xff]   ;;  %v1414_v8 = vld [vmem:[%s1734_s1] sm:$0xff]   ;;  %vm267_vm2 = vcmask 1043456   ;;  %s1480_s15 = smov 120   ;;  %s1481_s16 = smov 56   ;;  %vm1045_vm3 = vcmask 130048  }
   0xd   :  { %v1562_v9 = vld [vmem:[%s1733_s0] sm:$0xff]  ;;  %v1567_v10 = vld [vmem:[%s1733_s0 + $0x8] sm:$0xff]  ;;  %s1477_s0 = smov 96   ;;  %s1482_s17 = smov 112   ;;  %vm1048_vm4 = vcmask 195584   ;;  %vm1073_vm5 = vcmask 261120  }
   0xe   :  { %1257 = vmatpush3.bf16.msra.mxu0 %v1410_v4  ;;  %v24_v11 = vpack.c.bf16 %v1567_v10, %v1562_v9  ;;  %v1178_v12 = vld [vmem:[%s1735_s2] ss:$0 sm:$0xff]  ;;  %s1478_s2 = smov 64   ;;  %s1483_s18 = smov 80  }
   0xf   :  { %1258 = vmatprep.subr.bf16.mxu0 %v1475_v1  ;;  %s1484_s19 = smov 48   ;;  %s1485_s20 = smov 72  }
  0x10   :  { %s1486_s21 = smov 104   ;;  %s1487_s22 = smov 40  }
  0x11   :  { %s1488_s23 = smov 8   ;;  %s1489_s24 = smov 16  }
  0x12   :  { %1259 = vmatpush3.bf16.msra.mxu0 %v1411_v5  ;;  %s1490_s29 = smov 24  }
  0x13   :  { %1260 = vmatprep.subr.bf16.mxu0 %v1475_v1 }
  0x16   :  { %1261 = vmatpush3.bf16.msra.mxu0 %v1412_v6 }
  0x17   :  { %1262 = vmatprep.subr.bf16.mxu0 %v1475_v1 }
  0x1a   :  { %1263 = vmatpush3.bf16.msra.mxu0 %v1413_v7 }
  0x1b   :  { %1264 = vmatprep.subr.bf16.mxu0 %v1475_v1 }
  0x1e   :  { %1265 = vmatpush3.bf16.msra.mxu0 %v1414_v8 }
  0x1f   :  { %1294 = vmatprep.subr.bf16.mxu0 %v1475_v1 }
  0x21   :  { %1267 = vmatmul.mubr.bf16.vlgmr.msra.gmra.mxu0 %v24_v11 }
  0x22   :  { %1296 = vmatprep.mubr.msk.bf16.mxu0 %vm1476_vm0, %v1475_v1 }
  0xe1   :  { %v130_v13 = vpop.f32.mrf.mxu0 }
  0xe2   :  { %v131_v14 = vadd.f32 %v1178_v12, %v130_v13 }
  0xe3   :  { %v1268_v15 = vpop.f32.mrf.mxu0 }
  0xe4   :  { %v1578_v16 = vpack.c.bf16 %v131_v14, %v131_v14 }
  0xe5   :  { %v133_v17 = vpop.f32.mrf.mxu0 }
  0xe6   :  { %v134_v18 = vadd.f32 %v1178_v12, %v133_v17  ;;  %140 = vrot.lane.b32.xlu0 %v1578_v16, %s1477_s0 }
  0xe7   :  { %v1269_v19 = vpop.f32.mrf.mxu0 }
  0xe8   :  { %v1581_v20 = vpack.c.bf16 %v134_v18, %v134_v18 }
  0xea   :  { %190 = vrot.lane.b32.xlu0 %v1581_v20, %s1477_s0 }
 0x158   :  { %v141_v21 = vpop.permute.xlu0 %140 }
 0x159   :  { %v147_v22 = vsel %vm142_vm1, %v141_v21, 0 }
 0x15a   :  { %1271 = vmatpush3.bf16.xpose.msra.mxu1 %v147_v22 }
 0x15b   :  { %1276 = vmatprep.subr.bf16.mxu1 %v1475_v1 }
 0x15c   :  { %v191_v23 = vpop.permute.xlu0 %190 }
 0x15d   :  { %v196_v24 = vsel %vm142_vm1, %v191_v23, 0 }
 0x161   :  { %1273 = vmatmul.mubr.msk.bf16.vlgmr.msra.gmra.mxu1 %vm142_vm1, %v1578_v16 }
 0x162   :  { %1277 = vmatpush3.bf16.xpose.msra.mxu1 %v196_v24  ;;  %1278 = vmatprep.mubr.msk.bf16.mxu1 %vm1476_vm0, %v1475_v1 }
 0x163   :  { %1282 = vmatprep.subr.bf16.mxu1 %v1475_v1 }
 0x169   :  { %1279 = vmatmul.mubr.msk.bf16.vlgmr.msra.gmra.mxu1 %vm142_vm1, %v1581_v20 }
 0x16a   :  { %1284 = vmatprep.mubr.msk.bf16.mxu1 %vm1476_vm0, %v1475_v1 }
 0x221   :  { %v183_v25 = vpop.f32.mrf.mxu1 }
 0x222   :  { %v238_v26 = vsel %vm142_vm1, %v183_v25, -inf }
 0x223   :  { %239 = vmax.xlane.f32.xlu1 %v238_v26  ;;  %v1274_v27 = vpop.f32.mrf.mxu1 }
 0x225   :  { %v186_v28 = vpop.f32.mrf.mxu1 }
 0x227   :  { %v1275_v29 = vpop.f32.mrf.mxu1 }
 0x229   :  { %v232_v30 = vpop.f32.mrf.mxu1 }
 0x22a   :  { %v241_v31 = vsel %vm142_vm1, %v232_v30, -inf }
 0x22b   :  { %242 = vmax.xlane.f32.xlu1 %v241_v31  ;;  %v1280_v32 = vpop.f32.mrf.mxu1 }
 0x22d   :  { %v235_v33 = vpop.f32.mrf.mxu1 }
 0x22f   :  { %v1281_v34 = vpop.f32.mrf.mxu1 }
 0x23c   :  { %262 = vrot.lane.b32.xlu1 %v1578_v16, %s1478_s2 }
 0x240   :  { %311 = vrot.lane.b32.xlu1 %v1581_v20, %s1478_s2 }
 0x244   :  { %361 = vrot.lane.b32.xlu1 %v1578_v16, %s1479_s14 }
 0x2ac   :  { %v240_v35 = vpop.xlane.xlu1 %239 }
 0x2ad   :  { %v244_v36 = vsub.f32 %v183_v25, %v240_v35 }
 0x2af   :  { %v246_v37 = vmul.f32 1.442695, %v244_v36 }
 0x2b1   :  { %1417 = vpow2.f32 %v246_v37 }
 0x2b4   :  { %v243_v38 = vpop.xlane.xlu1 %242 }
 0x2b5   :  { %v245_v39 = vsub.f32 %v232_v30, %v243_v38 }
 0x2b7   :  { %v248_v40 = vmul.f32 1.442695, %v245_v39 }
 0x2b8   :  { %v263_v41 = vpop.permute.xlu1 %262 }
 0x2b9   :  { %1419 = vpow2.f32 %v248_v40  ;;  %v269_v42 = vsel %vm267_vm2, %v263_v41, 0 }
 0x2ba   :  { %1283 = vmatpush3.bf16.msra.mxu1 %v269_v42 }
 0x2bb   :  { %1288 = vmatprep.subr.bf16.mxu1 %v1475_v1 }
 0x2bc   :  { %v312_v43 = vpop.permute.xlu1 %311 }
 0x2bd   :  { %v317_v56 = vsel %vm267_vm2, %v312_v43, 0 }
 0x2be   :  { %v1418_v44 = vpop.eup %1417 }
 0x2bf   :  { %v250_v45 = vsel %vm142_vm1, %v1418_v44, 0.0 }
 0x2c0   :  { %251 = vadd.xlane.f32.xlu0 %v250_v45  ;;  %v362_v46 = vpop.permute.xlu1 %361 }
 0x2c1   :  { %v367_v47 = vsel %vm142_vm1, %v362_v46, 0 }
 0x2c2   :  { %1295 = vmatpush3.bf16.xpose.msra.mxu0 %v367_v47 }
 0x2c3   :  { %1306 = vmatprep.subr.bf16.mxu0 %v1475_v1 }
 0x2c6   :  { %v1420_v48 = vpop.eup %1419 }
 0x2c7   :  { %v253_v49 = vsel %vm142_vm1, %v1420_v48, 0.0 }
 0x2c8   :  { %254 = vadd.xlane.f32.xlu1 %v253_v49 }
 0x2d6   :  { %359 = vrot.lane.b32.xlu0 %v1578_v16, %s1480_s15 }
 0x2d9   :  { %411 = vrot.lane.b32.xlu1 %v1581_v20, %s1479_s14 }
 0x2dd   :  { %409 = vrot.lane.b32.xlu1 %v1581_v20, %s1480_s15 }
 0x349   :  { %v252_v50 = vpop.xlane.xlu0 %251 }
 0x34a   :  { %1421 = vrcp.f32 %v252_v50 }
 0x34d   :  { %v360_v51 = vpop.permute.xlu0 %359 }
 0x34e   :  { %1297 = vmatmul.mubr.msk.bf16.vlgmr.msra.gmra.mxu0 %vm142_vm1, %v360_v51 }
 0x34f   :  { %1308 = vmatprep.mubr.msk.bf16.mxu0 %vm1476_vm0, %v1475_v1 }
 0x351   :  { %v255_v52 = vpop.xlane.xlu1 %254 }
 0x352   :  { %1423 = vrcp.f32 %v255_v52 }
 0x355   :  { %v412_v59 = vpop.permute.xlu1 %411 }
 0x356   :  { %v417_v61 = vsel %vm142_vm1, %v412_v59, 0 }
 0x357   :  { %v1422_v53 = vpop.eup %1421 }
 0x358   :  { %v258_v54 = vmul.f32 %v1422_v53, %v1418_v44 }
 0x359   :  { %v410_v62 = vpop.permute.xlu1 %409 }
 0x35a   :  { %v260_v55 = vpack.c.bf16 %v258_v54, %v258_v54 }
 0x35c   :  { %1285 = vmatmul.mubr.msk.bf16.vlgmr.msra.gmra.mxu1 %vm142_vm1, %v260_v55 }
 0x35d   :  { %1289 = vmatpush3.bf16.msra.mxu1 %v317_v56  ;;  %1290 = vmatprep.mubr.msk.bf16.mxu1 %vm1476_vm0, %v1475_v1 }
 0x35e   :  { %1300 = vmatprep.subr.bf16.mxu1 %v1475_v1 }
 0x35f   :  { %v1424_v57 = vpop.eup %1423 }
 0x360   :  { %v259_v58 = vmul.f32 %v1424_v57, %v1420_v48 }
 0x362   :  { %v261_v60 = vpack.c.bf16 %v259_v58, %v259_v58 }
 0x364   :  { %1291 = vmatmul.mubr.msk.bf16.vlgmr.msra.gmra.mxu1 %vm142_vm1, %v261_v60 }
 0x365   :  { %1301 = vmatpush3.bf16.xpose.msra.mxu1 %v417_v61  ;;  %1302 = vmatprep.mubr.msk.bf16.mxu1 %vm1476_vm0, %v1475_v1 }
 0x366   :  { %1312 = vmatprep.subr.bf16.mxu1 %v1475_v1 }
 0x36c   :  { %1303 = vmatmul.mubr.msk.bf16.vlgmr.msra.gmra.mxu1 %vm142_vm1, %v410_v62 }
 0x36d   :  { %1314 = vmatprep.mubr.msk.bf16.mxu1 %vm1476_vm0, %v1475_v1 }
 0x40e   :  { %v403_v63 = vpop.f32.mrf.mxu0 }
 0x40f   :  { %v459_v0 = vsel %vm142_vm1, %v403_v63, -inf }
 0x410   :  { %460 = vmax.xlane.f32.xlu1 %v459_v0  ;;  %v1298_v2 = vpop.f32.mrf.mxu0 }
 0x412   :  { %v406_v3 = vpop.f32.mrf.mxu0 }
 0x414   :  { %v1299_v4 = vpop.f32.mrf.mxu0 }
 0x41c   :  { %v1627_v5 = vpop.f32.mrf.mxu1 }
 0x41e   :  { %v1286_v6 = vpop.f32.mrf.mxu1 }
 0x420   :  { %v308_v7 = vpop.f32.mrf.mxu1 }
 0x422   :  { %v1287_v8 = vpop.f32.mrf.mxu1 }
 0x424   :  { %v1629_v11 = vpop.f32.mrf.mxu1 }
 0x426   :  { %v1292_v12 = vpop.f32.mrf.mxu1 }
 0x428   :  { %v356_v13 = vpop.f32.mrf.mxu1 }
 0x42a   :  { %v1293_v14 = vpop.f32.mrf.mxu1 }
 0x42c   :  { %v453_v15 = vpop.f32.mrf.mxu1 }
 0x42d   :  { %v462_v17 = vsel %vm142_vm1, %v453_v15, -inf }
 0x42e   :  { %463 = vmax.xlane.f32.xlu0 %v462_v17  ;;  %v1304_v18 = vpop.f32.mrf.mxu1 }
 0x430   :  { %v456_v19 = vpop.f32.mrf.mxu1 }
 0x432   :  { %v1305_v21 = vpop.f32.mrf.mxu1 }
 0x444   :  { %531 = vrot.lane.b32.xlu0 %v1581_v20, %s1481_s16 }
 0x448   :  { %579 = vrot.lane.b32.xlu0 %v1578_v16, %s1482_s17 }
 0x499   :  { %v461_v22 = vpop.xlane.xlu1 %460 }
 0x49a   :  { %v465_v23 = vsub.f32 %v403_v63, %v461_v22 }
 0x49c   :  { %v467_v24 = vmul.f32 1.442695, %v465_v23 }
 0x49e   :  { %1425 = vpow2.f32 %v467_v24 }
 0x4ab   :  { %v1426_v25 = vpop.eup %1425 }
 0x4ac   :  { %v471_v26 = vsel %vm142_vm1, %v1426_v25, 0.0 }
 0x4ad   :  { %472 = vadd.xlane.f32.xlu1 %v471_v26 }
 0x4b7   :  { %v464_v27 = vpop.xlane.xlu0 %463 }
 0x4b8   :  { %v466_v30 = vsub.f32 %v453_v15, %v464_v27 }
 0x4ba   :  { %v469_v31 = vmul.f32 1.442695, %v466_v30 }
 0x4bb   :  { %v532_v28 = vpop.permute.xlu0 %531 }
 0x4bc   :  { %v537_v29 = vsel %vm267_vm2, %v532_v28, 0  ;;  %1427 = vpow2.f32 %v469_v31 }
 0x4bd   :  { %1313 = vmatpush3.bf16.msra.mxu1 %v537_v29 }
 0x4be   :  { %483 = vrot.lane.b32.xlu1 %v1578_v16, %s1481_s16  ;;  %1324 = vmatprep.subr.bf16.mxu1 %v1475_v1 }
 0x4bf   :  { %v580_v42 = vpop.permute.xlu0 %579 }
 0x4c2   :  { %581 = vrot.lane.b32.xlu1 %v1578_v16, %s1483_s18 }
 0x4c9   :  { %v1428_v32 = vpop.eup %1427 }
 0x4ca   :  { %v474_v33 = vsel %vm142_vm1, %v1428_v32, 0.0 }
 0x4e6   :  { %475 = vadd.xlane.f32.xlu1 %v474_v33 }
 0x4f7   :  { %631 = vrot.lane.b32.xlu1 %v1581_v20, %s1483_s18 }
 0x4fb   :  { %629 = vrot.lane.b32.xlu1 %v1581_v20, %s1482_s17 }
 0x536   :  { %v473_v34 = vpop.xlane.xlu1 %472 }
 0x537   :  { %1429 = vrcp.f32 %v473_v34 }
 0x53a   :  { %v484_v35 = vpop.permute.xlu1 %483 }
 0x53b   :  { %v489_v36 = vsel %vm267_vm2, %v484_v35, 0 }
 0x53c   :  { %1307 = vmatpush3.bf16.msra.mxu0 %v489_v36 }
 0x53d   :  { %1318 = vmatprep.subr.bf16.mxu0 %v1475_v1 }
 0x53e   :  { %v582_v39 = vpop.permute.xlu1 %581 }
 0x53f   :  { %v587_v41 = vsel %vm142_vm1, %v582_v39, 0 }
 0x544   :  { %v1430_v37 = vpop.eup %1429 }
 0x545   :  { %v479_v38 = vmul.f32 %v1430_v37, %v1426_v25 }
 0x547   :  { %v481_v40 = vpack.c.bf16 %v479_v38, %v479_v38 }
 0x549   :  { %1309 = vmatmul.mubr.msk.bf16.vlgmr.msra.gmra.mxu0 %vm142_vm1, %v481_v40 }
 0x54a   :  { %1319 = vmatpush3.bf16.xpose.msra.mxu0 %v587_v41  ;;  %1320 = vmatprep.mubr.msk.bf16.mxu0 %vm1476_vm0, %v1475_v1 }
 0x54b   :  { %1330 = vmatprep.subr.bf16.mxu0 %v1475_v1 }
 0x551   :  { %1321 = vmatmul.mubr.msk.bf16.vlgmr.msra.gmra.mxu0 %vm142_vm1, %v580_v42 }
 0x552   :  { %1332 = vmatprep.mubr.msk.bf16.mxu0 %vm1476_vm0, %v1475_v1 }
 0x56f   :  { %v476_v43 = vpop.xlane.xlu1 %475 }
 0x570   :  { %1431 = vrcp.f32 %v476_v43 }
 0x573   :  { %v632_v46 = vpop.permute.xlu1 %631 }
 0x574   :  { %v637_v48 = vsel %vm142_vm1, %v632_v46, 0 }
 0x577   :  { %v630_v49 = vpop.permute.xlu1 %629 }
 0x57d   :  { %v1432_v44 = vpop.eup %1431 }
 0x57e   :  { %v480_v45 = vmul.f32 %v1432_v44, %v1428_v32 }
 0x580   :  { %v482_v47 = vpack.c.bf16 %v480_v45, %v480_v45 }
 0x582   :  { %1315 = vmatmul.mubr.msk.bf16.vlgmr.msra.gmra.mxu1 %vm142_vm1, %v482_v47 }
 0x583   :  { %1325 = vmatpush3.bf16.xpose.msra.mxu1 %v637_v48  ;;  %1326 = vmatprep.mubr.msk.bf16.mxu1 %vm1476_vm0, %v1475_v1 }
 0x584   :  { %1336 = vmatprep.subr.bf16.mxu1 %v1475_v1 }
 0x58a   :  { %1327 = vmatmul.mubr.msk.bf16.vlgmr.msra.gmra.mxu1 %vm142_vm1, %v630_v49 }
 0x58b   :  { %1338 = vmatprep.mubr.msk.bf16.mxu1 %vm1476_vm0, %v1475_v1 }
 0x609   :  { %v1660_v50 = vpop.f32.mrf.mxu0 }
 0x60b   :  { %v1310_v51 = vpop.f32.mrf.mxu0 }
 0x60d   :  { %v528_v52 = vpop.f32.mrf.mxu0 }
 0x60f   :  { %v1311_v53 = vpop.f32.mrf.mxu0 }
 0x611   :  { %v623_v54 = vpop.f32.mrf.mxu0 }
 0x612   :  { %v679_v55 = vsel %vm142_vm1, %v623_v54, -inf }
 0x613   :  { %680 = vmax.xlane.f32.xlu0 %v679_v55  ;;  %v1322_v56 = vpop.f32.mrf.mxu0 }
 0x615   :  { %v626_v57 = vpop.f32.mrf.mxu0 }
 0x617   :  { %v1323_v58 = vpop.f32.mrf.mxu0 }
 0x642   :  { %v1663_v59 = vpop.f32.mrf.mxu1 }
 0x643   :  { %v1392_v60 = vpack.i.bf16 %v1663_v59, %v1660_v50 }
 0x644   :  { %v1316_v61 = vpop.f32.mrf.mxu1 }
 0x646   :  { %v576_v62 = vpop.f32.mrf.mxu1 }
 0x648   :  { %v1317_v63 = vpop.f32.mrf.mxu1 }
 0x64a   :  { %v673_v0 = vpop.f32.mrf.mxu1 }
 0x64b   :  { %v682_v2 = vsel %vm142_vm1, %v673_v0, -inf }
 0x64c   :  { %683 = vmax.xlane.f32.xlu1 %v682_v2  ;;  %v1328_v3 = vpop.f32.mrf.mxu1 }
 0x64e   :  { %v676_v4 = vpop.f32.mrf.mxu1 }
 0x650   :  { %v1329_v6 = vpop.f32.mrf.mxu1 }
 0x65d   :  { %703 = vrot.lane.b32.xlu1 %v1578_v16, %s1484_s19 }
 0x661   :  { %801 = vrot.lane.b32.xlu1 %v1578_v16, %s1485_s20 }
 0x665   :  { %851 = vrot.lane.b32.xlu1 %v1581_v20, %s1485_s20 }
 0x669   :  { %849 = vrot.lane.b32.xlu1 %v1581_v20, %s1486_s21 }
 0x69c   :  { %v681_v7 = vpop.xlane.xlu0 %680 }
 0x69d   :  { %v685_v8 = vsub.f32 %v623_v54, %v681_v7 }
 0x69f   :  { %v687_v12 = vmul.f32 1.442695, %v685_v8 }
 0x6a1   :  { %1433 = vpow2.f32 %v687_v12 }
 0x6ae   :  { %v1434_v13 = vpop.eup %1433 }
 0x6af   :  { %v691_v14 = vsel %vm142_vm1, %v1434_v13, 0.0 }
 0x6b0   :  { %692 = vadd.xlane.f32.xlu0 %v691_v14 }
 0x6d5   :  { %v684_v15 = vpop.xlane.xlu1 %683 }
 0x6d6   :  { %v686_v17 = vsub.f32 %v673_v0, %v684_v15 }
 0x6d8   :  { %v689_v18 = vmul.f32 1.442695, %v686_v17 }
 0x6d9   :  { %v704_v19 = vpop.permute.xlu1 %703 }
 0x6da   :  { %1435 = vpow2.f32 %v689_v18  ;;  %v709_v21 = vsel %vm267_vm2, %v704_v19, 0 }
 0x6db   :  { %1331 = vmatpush3.bf16.msra.mxu0 %v709_v21 }
 0x6dc   :  { %1342 = vmatprep.subr.bf16.mxu0 %v1475_v1 }
 0x6dd   :  { %v802_v27 = vpop.permute.xlu1 %801 }
 0x6de   :  { %v807_v29 = vsel %vm142_vm1, %v802_v27, 0  ;;  %v1416_v27 = vld [vmem:[%s1736_s3] sm:$0xff]  }
 0x6e1   :  { %v852_v36 = vpop.permute.xlu1 %851 }
 0x6e2   :  { %v857_v38 = vsel %vm142_vm1, %v852_v36, 0 }
 0x6e5   :  { %v850_v39 = vpop.permute.xlu1 %849 }
 0x6e7   :  { %v1436_v22 = vpop.eup %1435 }
 0x6e8   :  { %v694_v23 = vsel %vm142_vm1, %v1436_v22, 0.0 }
 0x6e9   :  { %695 = vadd.xlane.f32.xlu0 %v694_v23 }
 0x6ff   :  { %751 = vrot.lane.b32.xlu0 %v1581_v20, %s1484_s19 }
 0x703   :  { %799 = vrot.lane.b32.xlu0 %v1578_v16, %s1486_s21 }
 0x739   :  { %v693_v24 = vpop.xlane.xlu0 %692 }
 0x73a   :  { %1437 = vrcp.f32 %v693_v24 }
 0x747   :  { %v1438_v25 = vpop.eup %1437 }
 0x748   :  { %v699_v26 = vmul.f32 %v1438_v25, %v1434_v13 }
 0x74a   :  { %v701_v28 = vpack.c.bf16 %v699_v26, %v699_v26 }
 0x74c   :  { %1333 = vmatmul.mubr.msk.bf16.vlgmr.msra.gmra.mxu0 %vm142_vm1, %v701_v28 }
 0x74d   :  { %1343 = vmatpush3.bf16.xpose.msra.mxu0 %v807_v29  ;;  %1344 = vmatprep.mubr.msk.bf16.mxu0 %vm1476_vm0, %v1475_v1 }
 0x74e   :  { %1354 = vmatprep.subr.bf16.mxu0 %v1475_v1 }
 0x772   :  { %v696_v30 = vpop.xlane.xlu0 %695 }
 0x773   :  { %1439 = vrcp.f32 %v696_v30 }
 0x776   :  { %v752_v31 = vpop.permute.xlu0 %751 }
 0x777   :  { %v757_v32 = vsel %vm267_vm2, %v752_v31, 0 }
 0x778   :  { %1337 = vmatpush3.bf16.msra.mxu1 %v757_v32 }
 0x779   :  { %1348 = vmatprep.subr.bf16.mxu1 %v1475_v1 }
 0x77a   :  { %v800_v33 = vpop.permute.xlu0 %799 }
 0x77b   :  { %1345 = vmatmul.mubr.msk.bf16.vlgmr.msra.gmra.mxu0 %vm142_vm1, %v800_v33 }
 0x77c   :  { %1356 = vmatprep.mubr.msk.bf16.mxu0 %vm1476_vm0, %v1475_v1 }
 0x780   :  { %v1440_v34 = vpop.eup %1439 }
 0x781   :  { %v700_v35 = vmul.f32 %v1440_v34, %v1436_v22 }
 0x783   :  { %v702_v37 = vpack.c.bf16 %v700_v35, %v700_v35 }
 0x785   :  { %1339 = vmatmul.mubr.msk.bf16.vlgmr.msra.gmra.mxu1 %vm142_vm1, %v702_v37 }
 0x786   :  { %1349 = vmatpush3.bf16.xpose.msra.mxu1 %v857_v38  ;;  %1350 = vmatprep.mubr.msk.bf16.mxu1 %vm1476_vm0, %v1475_v1 }
 0x787   :  { %1360 = vmatprep.subr.bf16.mxu1 %v1475_v1 }
 0x78d   :  { %1351 = vmatmul.mubr.msk.bf16.vlgmr.msra.gmra.mxu1 %vm142_vm1, %v850_v39 }
 0x78e   :  { %1362 = vmatprep.mubr.msk.bf16.mxu1 %vm1476_vm0, %v1475_v1 }
 0x80c   :  { %v745_v40 = vpop.f32.mrf.mxu0 }
 0x80e   :  { %v1334_v41 = vpop.f32.mrf.mxu0 }
 0x810   :  { %v748_v42 = vpop.f32.mrf.mxu0 }
 0x812   :  { %v1335_v43 = vpop.f32.mrf.mxu0 }
 0x83b   :  { %v843_v44 = vpop.f32.mrf.mxu0 }
 0x83c   :  { %v899_v45 = vsel %vm142_vm1, %v843_v44, -inf }
 0x83d   :  { %900 = vmax.xlane.f32.xlu0 %v899_v45  ;;  %v1346_v46 = vpop.f32.mrf.mxu0 }
 0x83f   :  { %v846_v47 = vpop.f32.mrf.mxu0 }
 0x841   :  { %v1347_v48 = vpop.f32.mrf.mxu0 }
 0x842   :  { %v1057_v48 = vlaneseq }
 0x845   :  { %v793_v49 = vpop.f32.mrf.mxu1 }
 0x846   :  { %v1397_v61 = vpack.i.bf16 %v793_v49, %v745_v40  ;;  %v1058_v49 = vshrl.u32 %v1057_v48, 7 }
 0x847   :  { %v1340_v51 = vpop.f32.mrf.mxu1 }
 0x848   :  { %v1059_v51 = vsub.s32 0, %v1058_v49 }
 0x849   :  { %v796_v52 = vpop.f32.mrf.mxu1 }
 0x84a   :  { %v1051_v52 = vld [vmem:[%s1737_s4] sm:$0x7]  ;;  %s1491_s4 = smov [#allocation2]  }
 0x84b   :  { %v1341_v53 = vpop.f32.mrf.mxu1  ;;  %s1167_s6 = sshll.u32 %s1491_s4, 4  ;;  %s1168_s6 = int_to_ptr.vmem [resolvable:$true] %s1167_s6 }
 0x84c   :  { %s1453_s7 = scalar_lea.vmem %s1168_s6, 256  ;;  %p1458_p1 = scmp.lt.s32.totalorder %s1168_s6, %s1168_s6 }
 0x84d   :  { %v893_v54 = vpop.f32.mrf.mxu1  ;;  %p1454_p0 = scmp.ne.s32.totalorder %s1168_s6, %s1453_s7  ;;  %p1459_p2 = scmp.lt.s32.totalorder %s1453_s7, %s1453_s7 }
 0x84e   :  { %v902_v55 = vsel %vm142_vm1, %v893_v54, -inf }
 0x84f   :  { %903 = vmax.xlane.f32.xlu1 %v902_v55  ;;  %v1352_v56 = vpop.f32.mrf.mxu1  ;;  %p1460_p3 = por %p1459_p2, %p1458_p1 }
 0x851   :  { %v896_v57 = vpop.f32.mrf.mxu1  ;;  %p1461_p4 = pnand %p1460_p3, %p1454_p0 }
 0x853   :  { %v1353_v58 = vpop.f32.mrf.mxu1 }
 0x860   :  { %923 = vrot.lane.b32.xlu1 %v1578_v16, %s1487_s22 }
 0x864   :  { %1393 = vrot.lane.b32.xlu1 %v1392_v60, %s1488_s23 }
 0x868   :  { %1398 = vrot.lane.b32.xlu1 %v1397_v61, %s1489_s24 }
 0x8c6   :  { %v901_v62 = vpop.xlane.xlu0 %900 }
 0x8c7   :  { %v905_v63 = vsub.f32 %v843_v44, %v901_v62 }
 0x8c9   :  { %v907_v0 = vmul.f32 1.442695, %v905_v63 }
 0x8cb   :  { %1441 = vpow2.f32 %v907_v0 }
 0x8d8   :  { %v1442_v2 = vpop.eup %1441  ;;  %v904_v3 = vpop.xlane.xlu1 %903 }
 0x8d9   :  { %v906_v4 = vsub.f32 %v893_v54, %v904_v3  ;;  %v911_v6 = vsel %vm142_vm1, %v1442_v2, 0.0 }
 0x8da   :  { %912 = vadd.xlane.f32.xlu0 %v911_v6 }
 0x8db   :  { %v909_v16 = vmul.f32 1.442695, %v906_v4 }
 0x8dc   :  { %v924_v7 = vpop.permute.xlu1 %923 }
 0x8dd   :  { %1443 = vpow2.f32 %v909_v16  ;;  %v929_v8 = vsel %vm267_vm2, %v924_v7, 0 }
 0x8de   :  { %1355 = vmatpush3.bf16.msra.mxu0 %v929_v8 }
 0x8df   :  { %1366 = vmatprep.subr.bf16.mxu0 %v1475_v1 }
 0x8e0   :  { %v1394_v33 = vpop.permute.xlu1 %1393 }
 0x8e1   :  { %v1396_v35 = vunpack.i.h.bf16 %v1394_v33 }
 0x8e3   :  { %v1044_v39 = vsel %vm142_vm1, %v1629_v11, %v1396_v35  ;;  %v1060_v11 = vrot.slane %v1051_v52, %v1059_v51 }
 0x8e4   :  { %v1399_v34 = vpop.permute.xlu1 %1398 }
 0x8e5   :  { %v1401_v36 = vunpack.i.h.bf16 %v1399_v34  ;;  %v1400_v37 = vunpack.i.l.bf16 %v1399_v34 }
 0x8e7   :  { %v1047_v43 = vsel %vm1045_vm3, %v1044_v39, %v1401_v36 }
 0x8ea   :  { %v1444_v50 = vpop.eup %1443 }
 0x8eb   :  { %v914_v59 = vsel %vm142_vm1, %v1444_v50, 0.0 }
 0x8ec   :  { %915 = vadd.xlane.f32.xlu0 %v914_v59 }
 0x902   :  { %971 = vrot.lane.b32.xlu0 %v1581_v20, %s1487_s22  ;;  %v1415_v20 = vld [vmem:[%s1736_s3 + $0x8] sm:$0xff]  }
 0x963   :  { %v913_v60 = vpop.xlane.xlu0 %912 }
 0x964   :  { %1445 = vrcp.f32 %v913_v60 }
 0x971   :  { %v1446_v12 = vpop.eup %1445 }
 0x972   :  { %v919_v13 = vmul.f32 %v1446_v12, %v1442_v2 }
 0x974   :  { %v921_v14 = vpack.c.bf16 %v919_v13, %v919_v13 }
 0x975   :  { %v916_v15 = vpop.xlane.xlu0 %915 }
 0x976   :  { %1447 = vrcp.f32 %v916_v15  ;;  %1357 = vmatmul.mubr.msk.bf16.vlgmr.msra.gmra.mxu0 %vm142_vm1, %v921_v14  ;;  %v1150_v15 = vsub.s32 1, %v1058_v49 }
 0x977   :  { %1370 = vmatprep.mubr.msk.bf16.mxu0 %vm1476_vm0, %v1475_v1  ;;  %1367 = vmatpush3.bf16.msra.mxu0 %v1415_v20 }
 0x978   :  { %1368 = vmatprep.subr.bf16.mxu0 %v1475_v1  ;;  %v1395_v1 = vunpack.i.l.bf16 %v1394_v33 }
 0x979   :  { %v972_v17 = vpop.permute.xlu0 %971 }
 0x97a   :  { %v977_v18 = vsel %vm267_vm2, %v972_v17, 0  ;;  %v1043_v40 = vsel %vm142_vm1, %v1627_v5, %v1395_v1  ;;  %v1156_v17 = vsub.s32 2, %v1058_v49 }
 0x97b   :  { %1361 = vmatpush3.bf16.msra.mxu1 %v977_v18  ;;  %1369 = vmatpush3.bf16.msra.mxu0 %v1416_v27  ;;  %v1046_v44 = vsel %vm1045_vm3, %v1043_v40, %v1400_v37  ;;  %v1151_v18 = vrot.slane %v1051_v52, %v1150_v15 }
 0x983   :  { %v1448_v19 = vpop.eup %1447 }
 0x984   :  { %v920_v21 = vmul.f32 %v1448_v19, %v1444_v50 }
 0x986   :  { %v922_v22 = vpack.c.bf16 %v920_v21, %v920_v21 }
 0x988   :  { %1363 = vmatmul.mubr.msk.bf16.vlgmr.msra.gmra.mxu1 %vm142_vm1, %v922_v22  ;;  %v1157_v22 = vrot.slane %v1051_v52, %v1156_v17 }
 0xa36   :  { %v965_v23 = vpop.f32.mrf.mxu0 }
 0xa38   :  { %v1358_v24 = vpop.f32.mrf.mxu0 }
 0xa3a   :  { %v968_v25 = vpop.f32.mrf.mxu0 }
 0xa3c   :  { %v1359_v26 = vpop.f32.mrf.mxu0 }
 0xa48   :  { %v1013_v28 = vpop.f32.mrf.mxu1 }
 0xa49   :  { %v1402_v29 = vpack.i.bf16 %v1013_v28, %v965_v23 }
 0xa4a   :  { %v1364_v30 = vpop.f32.mrf.mxu1 }
 0xa4b   :  { %1403 = vrot.lane.b32.xlu0 %v1402_v29, %s1490_s29 }
 0xa4c   :  { %v1016_v31 = vpop.f32.mrf.mxu1 }
 0xa4e   :  { %v1365_v32 = vpop.f32.mrf.mxu1 }
 0xabd   :  { %v1404_v38 = vpop.permute.xlu0 %1403 }
 0xabe   :  { %v1406_v41 = vunpack.i.h.bf16 %v1404_v38  ;;  %v1405_v42 = vunpack.i.l.bf16 %v1404_v38 }
 0xac0   :  { %v1050_v45 = vsel %vm1048_vm4, %v1047_v43, %v1406_v41  ;;  %v1049_v46 = vsel %vm1048_vm4, %v1046_v44, %v1405_v42 }
 0xac1   :  { %v1052_v47 = vpack.c.bf16 %v1050_v45, %v1049_v46 }
 0xac3   :  { %1371 = vmatmul.mubr.msk.bf16.vlgmr.msra.gmra.mxu0 %vm1073_vm5, %v1052_v47 }
 0xb83   :  { %v1111_v53 = vpop.f32.mrf.mxu0 }
 0xb84   :  { %v1112_v54 = vadd.f32 %v1111_v53, %v1060_v11 }
 0xb85   :  { %v1372_v5 = vpop.f32.mrf.mxu0 }
 0xb86   :  { %v1118_v55 = vadd.f32 %v1112_v54, %v1562_v9 }
 0xb87   :  { %v1114_v56 = vpop.f32.mrf.mxu0 }
 0xb88   :  { %v1115_v57 = vadd.f32 %v1114_v56, %v1060_v11  ;;  %1120 = vadd.xlane.f32.xlu1 %v1118_v55  ;;  %v1126_v63 = vmul.f32 %v1118_v55, %v1118_v55 }
 0xb89   :  { %v1373_v58 = vpop.f32.mrf.mxu0 }
 0xb8a   :  { %v1119_v61 = vadd.f32 %v1115_v57, %v1567_v10 }
 0xb8c   :  { %1122 = vadd.xlane.f32.xlu0 %v1119_v61  ;;  %v1127_v62 = vmul.f32 %v1119_v61, %v1119_v61 }
 0xb8e   :  { %1130 = vadd.xlane.f32.xlu1 %v1127_v62 }
 0xb90   :  { %1128 = vadd.xlane.f32.xlu0 %v1126_v63 }
 0xc11   :  { %v1121_v0 = vpop.xlane.xlu1 %1120 }
 0xc12   :  { %v1124_v3 = vmul.f32 0.03125, %v1121_v0 }
 0xc14   :  { %v1134_v9 = vmul.f32 %v1124_v3, %v1124_v3  ;;  %v1144_v20 = vsub.f32 %v1118_v55, %v1124_v3 }
 0xc15   :  { %v1123_v2 = vpop.xlane.xlu0 %1122 }
 0xc16   :  { %v1125_v4 = vmul.f32 0.03125, %v1123_v2 }
 0xc17   :  { %v1131_v6 = vpop.xlane.xlu1 %1130 }
 0xc18   :  { %v1135_v16 = vmul.f32 %v1125_v4, %v1125_v4  ;;  %v1133_v7 = vmul.f32 0.03125, %v1131_v6  ;;  %v1145_v19 = vsub.f32 %v1119_v61, %v1125_v4 }
 0xc19   :  { %v1129_v8 = vpop.xlane.xlu0 %1128 }
 0xc1a   :  { %v1137_v50 = vsub.f32 %v1133_v7, %v1135_v16  ;;  %v1132_v59 = vmul.f32 0.03125, %v1129_v8 }
 0xc1c   :  { %v1139_v60 = vmax.f32 %v1137_v50, 0.0  ;;  %v1136_v12 = vsub.f32 %v1132_v59, %v1134_v9 }
 0xc1e   :  { %v1141_v13 = vadd.f32 1e-05, %v1139_v60  ;;  %v1138_v10 = vmax.f32 %v1136_v12, 0.0 }
 0xc20   :  { %1449 = vrsqrt.f32 %v1141_v13  ;;  %v1140_v14 = vadd.f32 1e-05, %v1138_v10 }
 0xc22   :  { %1451 = vrsqrt.f32 %v1140_v14 }
 0xc2d   :  { %v1450_v21 = vpop.eup %1449 }
 0xc2e   :  { %v1147_v23 = vmul.f32 %v1450_v21, %v1145_v19 }
 0xc2f   :  { %v1452_v24 = vpop.eup %1451 }
 0xc30   :  { %v1146_v25 = vmul.f32 %v1452_v24, %v1144_v20  ;;  %v1153_v26 = vmul.f32 %v1151_v18, %v1147_v23 }
 0xc32   :  { %v1152_v27 = vmul.f32 %v1151_v18, %v1146_v25  ;;  %v1159_v28 = vadd.f32 %v1157_v22, %v1153_v26 }
 0xc34   :  { %v1158_v29 = vadd.f32 %v1157_v22, %v1152_v27  ;;  %1161 = vst [vmem:[#allocation2 + $0x8] sm:$0xff] %v1159_v28 }
 0xc36   :  { %1160 = vst [vmem:[#allocation2] sm:$0xff] %v1158_v29 }
 0xc37   :  { %1464 = shalt.err (!%p1461_p4)
}
 0xc38   :  { %s1492_s8 = smov 128  }
 0xc39   :  { %1173 = dma.vmem_to_hbm [thread:$0]  %s1168_s6, 256, %s1738_s5, [#allocation3], %s1492_s8, %s1492_s8, %s1488_s23  }
 0xc3a   :  { %1473 = dma.done.wait [#allocation3], 256  }
 0xc3b   :  { %1474 = vsyncadd [#allocation3], 4294967040 }
 0xc3c   :  { %1177 = vsyncpa [#allocation3], 1 }

</bundles_post_ra>
